<compile_context>
chip_gen: v5e
topology: v5e:2x2
jax: 0.10.0
libtpu: 0.0.40
codegen_flags: <defaults>
</compile_context>

<pallas_src>
import functools
import math

import jax
import jax.numpy as jnp
from jax.experimental import pallas as pl
from jax.experimental.pallas import tpu as pltpu


_INV_SQRT2 = 1.0 / math.sqrt(2.0)


def _gelu(x, approximate):
    if approximate:
        # tanh-approx GELU -> EUP (own VLIW slot), nearly free next to the MXU.
        return jax.nn.gelu(x, approximate=True)
    # Exact (erf) GELU: matches torch.nn.functional.gelu default bit-for-bit
    # semantics, but costs a long VALU polynomial per element.
    return 0.5 * x * (1.0 + jax.lax.erf(x * _INV_SQRT2))


# ----------------------------------------------------------------------------
# Kernels
# ----------------------------------------------------------------------------

def _mlp_kernel_resident(x_ref, w1_ref, b1_ref, w2_ref, b2_ref, o_ref, *,
                         approximate):
    # Weights are full-array, constant-index blocks -> loaded into VMEM once
    # and reused across every row tile of the 1-D grid.
    h = jnp.dot(x_ref[...], w1_ref[...], preferred_element_type=jnp.float32)
    h = h + b1_ref[...]
    h = _gelu(h, approximate)
    y = jnp.dot(h.astype(w2_ref.dtype), w2_ref[...],
                preferred_element_type=jnp.float32)
    y = y + b2_ref[...]
    o_ref[...] = y.astype(o_ref.dtype)
    # TODO(synk): dropout is None in this configuration -> identity; a
    # stochastic dropout would use pltpu.prng_seed / pltpu.prng_random_bits.


def _mlp_kernel_streaming(x_ref, w1_ref, b1_ref, w2_ref, b2_ref, o_ref,
                          acc_ref, *, approximate):
    # Hidden dimension is the (last, "arbitrary") reduction grid axis; W1/W2
    # are streamed tile-by-tile and accumulated into a f32 VMEM scratch.
    k = pl.program_id(1)

    @pl.when(k == 0)
    def _init():
        # Fold the output bias into the accumulator init.
        acc_ref[...] = jnp.broadcast_to(b2_ref[...], acc_ref.shape)

    h = jnp.dot(x_ref[...], w1_ref[...], preferred_element_type=jnp.float32)
    h = h + b1_ref[...]
    h = _gelu(h, approximate)
    acc_ref[...] += jnp.dot(h.astype(w2_ref.dtype), w2_ref[...],
                            preferred_element_type=jnp.float32)

    @pl.when(k == pl.num_programs(1) - 1)
    def _finalize():
        o_ref[...] = acc_ref[...].astype(o_ref.dtype)


# ----------------------------------------------------------------------------
# Wrapper
# ----------------------------------------------------------------------------

def _round_up(a, b):
    return (a + b - 1) // b * b


def _sublane_multiple(dtype):
    # f32 -> 8, bf16 -> 16, int8/fp8 -> 32 rows per sublane tile.
    return max(8, 32 // jnp.dtype(dtype).itemsize)


def _vmem_capacity_bytes():
    try:
        cap = int(pltpu.get_tpu_info().vmem_capacity_bytes)
        if cap > 0:
            return cap
    except Exception:
        pass
    return 64 * 1024 * 1024  # conservative fallback (v7x per-TC VMEM)


def _pick_hidden_tile(hidden, tile_h):
    """Largest multiple of 128 that divides `hidden` and is <= tile_h."""
    if hidden <= tile_h:
        return hidden
    best = None
    th = 128
    limit = min(tile_h, hidden)
    while th <= limit:
        if hidden % th == 0:
            best = th
        th += 128
    return best if best is not None else hidden


@functools.partial(jax.jit, static_argnames=("tile_m", "tile_h", "approximate"))
def mlp_forward(x, w1, b1, w2, b2, *, tile_m=512, tile_h=2048,
                approximate=True):
    """x: (..., dim). w1: (dim, hidden) = W1.T, w2: (hidden, dim) = W2.T."""
    orig_shape = x.shape
    dim = orig_shape[-1]
    hidden = w1.shape[1]

    x2d = x.reshape(-1, dim)
    m = x2d.shape[0]

    xb = x2d.dtype.itemsize
    wb = w1.dtype.itemsize

    sub = _sublane_multiple(x2d.dtype)
    tm = min(_round_up(tile_m, sub), _round_up(m, sub))

    cap = _vmem_capacity_bytes()
    budget = int(cap * 3 // 4)  # leave headroom for compiler-internal scratch

    # Biases cast to f32 once here (hoisted out of the hot loop).
    b1_2d = b1.reshape(1, hidden).astype(jnp.float32)
    b2_2d = b2.reshape(1, dim).astype(jnp.float32)

    def resident_bytes(tm_):
        return (dim * hidden * wb + hidden * dim * wb      # W1/W2, resident once
                + 2 * tm_ * dim * xb                       # x tile (2-buffered)
                + 2 * tm_ * dim * xb                       # out tile (2-buffered)
                + hidden * 4 + dim * 4                     # biases
                + 2 * tm_ * hidden * 4)                    # f32 h intermediate headroom

    def streaming_bytes(tm_, th_):
        return (2 * (dim * th_ * wb + th_ * dim * wb)      # W1/W2 tiles (2-buffered)
                + 2 * tm_ * dim * xb                       # x tile
                + 2 * tm_ * dim * xb                       # out tile
                + 2 * (th_ * 4 + dim * 4)                  # bias slices
                + tm_ * dim * 4                            # f32 accumulator
                + 2 * tm_ * th_ * 4)                       # f32 h intermediate headroom

    # ---- Prefer weight-resident mode (weights DMA'd from HBM exactly once).
    tm_res = tm
    while tm_res > sub and resident_bytes(tm_res) > budget:
        tm_res = _round_up(max(sub, tm_res // 2), sub)
    use_resident = resident_bytes(tm_res) <= budget

    if use_resident:
        tm = tm_res
        grid = (pl.cdiv(m, tm),)
        needed = resident_bytes(tm)
        kernel = functools.partial(_mlp_kernel_resident, approximate=approximate)
        grid_spec = pltpu.PrefetchScalarGridSpec(
            num_scalar_prefetch=0,
            grid=grid,
            in_specs=[
                pl.BlockSpec((tm, dim), lambda i: (i, 0)),       # x row tile
                pl.BlockSpec((dim, hidden), lambda i: (0, 0)),   # W1^T (resident)
                pl.BlockSpec((1, hidden), lambda i: (0, 0)),     # b1   (resident)
                pl.BlockSpec((hidden, dim), lambda i: (0, 0)),   # W2^T (resident)
                pl.BlockSpec((1, dim), lambda i: (0, 0)),        # b2   (resident)
            ],
            out_specs=pl.BlockSpec((tm, dim), lambda i: (i, 0)),
            scratch_shapes=[],
        )
        dims_sem = ("parallel",)
        weight_reads = 1
    else:
        # ---- Streaming fallback: tile the hidden (reduction) axis.
        th = _pick_hidden_tile(hidden, tile_h)
        while th > 256 and hidden % th == 0 and streaming_bytes(tm, th) > budget:
            new_th = _pick_hidden_tile(hidden, th // 2)
            if new_th >= th:
                break
            th = new_th
        while tm > sub and streaming_bytes(tm, th) > budget:
            tm = _round_up(max(sub, tm // 2), sub)

        grid = (pl.cdiv(m, tm), hidden // th)
        needed = streaming_bytes(tm, th)
        kernel = functools.partial(_mlp_kernel_streaming, approximate=approximate)
        grid_spec = pltpu.PrefetchScalarGridSpec(
            num_scalar_prefetch=0,
            grid=grid,
            in_specs=[
                pl.BlockSpec((tm, dim), lambda i, k: (i, 0)),    # x row tile
                pl.BlockSpec((dim, th), lambda i, k: (0, k)),    # W1^T cols
                pl.BlockSpec((1, th), lambda i, k: (0, k)),      # b1 slice
                pl.BlockSpec((th, dim), lambda i, k: (k, 0)),    # W2^T rows
                pl.BlockSpec((1, dim), lambda i, k: (0, 0)),     # b2 (constant)
            ],
            out_specs=pl.BlockSpec((tm, dim), lambda i, k: (i, 0)),
            scratch_shapes=[pltpu.VMEM((tm, dim), jnp.float32)],
        )
        dims_sem = ("parallel", "arbitrary")
        weight_reads = grid[0]  # weights re-streamed once per row tile

    # Scoped VMEM: enough for the estimated footprint, never above physical.
    vmem_limit = int(min(max(needed * 3 // 2, 32 * 1024 * 1024),
                         cap - (2 << 20)))
    vmem_limit = max(vmem_limit, needed)

    cost = pl.CostEstimate(
        flops=4 * m * dim * hidden,                       # two matmuls
        transcendentals=m * hidden,                       # one tanh/erf per act
        bytes_accessed=(x2d.size * xb
                        + (w1.size + w2.size) * wb * weight_reads
                        + b1_2d.size * 4 + b2_2d.size * 4
                        + m * dim * xb),
    )

    out = pl.pallas_call(
        kernel,
        out_shape=jax.ShapeDtypeStruct((m, dim), x.dtype),
        grid_spec=grid_spec,
        compiler_params=pltpu.CompilerParams(
            dimension_semantics=dims_sem,
            vmem_limit_bytes=vmem_limit,
        ),
        cost_estimate=cost,
    )(x2d, w1, b1_2d, w2, b2_2d)

    return out.reshape(orig_shape)


# ----------------------------------------------------------------------------
# Params / reference / test
# ----------------------------------------------------------------------------

def init_mlp_params(key, dim, multiple_of=4, dtype=jnp.float32):
    """Deterministic init mirroring nn.Linear shapes (stored transposed)."""
    hidden = multiple_of * dim
    k1, k2, k3, k4 = jax.random.split(key, 4)
    lim1 = 1.0 / math.sqrt(dim)
    lim2 = 1.0 / math.sqrt(hidden)
    w1 = jax.random.uniform(k1, (dim, hidden), dtype, -lim1, lim1)   # = W1.T
    b1 = jax.random.uniform(k2, (hidden,), dtype, -lim1, lim1)
    w2 = jax.random.uniform(k3, (hidden, dim), dtype, -lim2, lim2)   # = W2.T
    b2 = jax.random.uniform(k4, (dim,), dtype, -lim2, lim2)
    return w1, b1, w2, b2


def mlp_reference(x, w1, b1, w2, b2, approximate=True):
    h = x @ w1 + b1
    h = jax.nn.gelu(h, approximate=approximate)
    return h @ w2 + b2


if __name__ == "__main__":
    key = jax.random.PRNGKey(0)
    kx, kp = jax.random.split(key)

    batch, seq, dim = 2, 8, 32          # hidden = 4 * dim = 128
    x = jax.random.normal(kx, (batch, seq, dim), jnp.float32)
    w1, b1, w2, b2 = init_mlp_params(kp, dim, multiple_of=4)

    # Default path: tanh-approx GELU (EUP-friendly).
    y = mlp_forward(x, w1, b1, w2, b2)
    y = jax.block_until_ready(y)
    y_ref = mlp_reference(x, w1, b1, w2, b2, approximate=True)
    assert y.shape == x.shape
    assert jnp.allclose(y, y_ref, atol=1e-4, rtol=1e-4), "mismatch (tanh gelu)"

    # Exact-erf path (bit-parity with torch F.gelu default) remains available.
    y_exact = mlp_forward(x, w1, b1, w2, b2, approximate=False)
    y_exact = jax.block_until_ready(y_exact)
    y_ref_exact = mlp_reference(x, w1, b1, w2, b2, approximate=False)
    assert jnp.allclose(y_exact, y_ref_exact, atol=1e-4, rtol=1e-4), \
        "mismatch (erf gelu)"

    print("KERNEL_OK")
</pallas_src>

<mosaic_0001>
module attributes {stable_mosaic.version = 11 : i64} {
  func.func @_mlp_kernel_resident(%arg0: i32, %arg1: memref<16x32xf32, #tpu.memory_space<vmem>>, %arg2: memref<32x128xf32, #tpu.memory_space<vmem>>, %arg3: memref<1x128xf32, #tpu.memory_space<vmem>>, %arg4: memref<128x32xf32, #tpu.memory_space<vmem>>, %arg5: memref<1x32xf32, #tpu.memory_space<vmem>>, %arg6: memref<16x32xf32, #tpu.memory_space<vmem>>) attributes {dimension_semantics = [#tpu.dimension_semantics<parallel>], iteration_bounds = array<i64: 1>, scalar_prefetch = 0 : i64, scratch_operands = 0 : i64, tpu.core_type = #tpu.core_type<tc>, window_params = [{transform_indices = @transform_0, window_bounds = array<i64: 16, 32>}, {pipeline_mode = #tpu.pipeline_mode<synchronous>, transform_indices = @transform_1, window_bounds = array<i64: 32, 128>}, {pipeline_mode = #tpu.pipeline_mode<synchronous>, transform_indices = @transform_2, window_bounds = array<i64: 1, 128>}, {pipeline_mode = #tpu.pipeline_mode<synchronous>, transform_indices = @transform_3, window_bounds = array<i64: 128, 32>}, {pipeline_mode = #tpu.pipeline_mode<synchronous>, transform_indices = @transform_4, window_bounds = array<i64: 1, 32>}, {transform_indices = @transform_5, window_bounds = array<i64: 16, 32>}]} {
    %c0 = arith.constant 0 : index
    %c0_0 = arith.constant 0 : index
    %0 = vector.load %arg1[%c0, %c0_0] : memref<16x32xf32, #tpu.memory_space<vmem>>, vector<16x32xf32>
    %c0_1 = arith.constant 0 : index
    %c0_2 = arith.constant 0 : index
    %1 = vector.load %arg2[%c0_1, %c0_2] : memref<32x128xf32, #tpu.memory_space<vmem>>, vector<32x128xf32>
    %cst = arith.constant dense<0.000000e+00> : vector<16x128xf32>
    %2 = tpu.matmul %0, %1, %cst {dimension_numbers = #tpu.dot_dimension_numbers<[1], [0], [0], [1], [0, 0, 1, 1], [], []>} : vector<16x32xf32>, vector<32x128xf32>, vector<16x128xf32> -> vector<16x128xf32>
    %c0_3 = arith.constant 0 : index
    %c0_4 = arith.constant 0 : index
    %3 = vector.load %arg3[%c0_3, %c0_4] : memref<1x128xf32, #tpu.memory_space<vmem>>, vector<1x128xf32>
    %4 = vector.broadcast %3 : vector<1x128xf32> to vector<16x128xf32>
    %5 = arith.addf %2, %4 : vector<16x128xf32>
    %6 = arith.mulf %5, %5 : vector<16x128xf32>
    %7 = arith.mulf %5, %6 : vector<16x128xf32>
    %cst_5 = arith.constant 4.471500e-02 : f32
    %8 = vector.broadcast %cst_5 : f32 to vector<16x128xf32>
    %9 = arith.mulf %8, %7 : vector<16x128xf32>
    %10 = arith.addf %5, %9 : vector<16x128xf32>
    %cst_6 = arith.constant 0.797884583 : f32
    %11 = vector.broadcast %cst_6 : f32 to vector<16x128xf32>
    %12 = arith.mulf %11, %10 : vector<16x128xf32>
    %13 = math.tanh %12 : vector<16x128xf32>
    %cst_7 = arith.constant 1.000000e+00 : f32
    %14 = vector.broadcast %cst_7 : f32 to vector<16x128xf32>
    %15 = arith.addf %14, %13 : vector<16x128xf32>
    %cst_8 = arith.constant 5.000000e-01 : f32
    %16 = vector.broadcast %cst_8 : f32 to vector<16x128xf32>
    %17 = arith.mulf %16, %15 : vector<16x128xf32>
    %18 = arith.mulf %5, %17 : vector<16x128xf32>
    %c0_9 = arith.constant 0 : index
    %c0_10 = arith.constant 0 : index
    %19 = vector.load %arg4[%c0_9, %c0_10] : memref<128x32xf32, #tpu.memory_space<vmem>>, vector<128x32xf32>
    %cst_11 = arith.constant dense<0.000000e+00> : vector<16x32xf32>
    %20 = tpu.matmul %18, %19, %cst_11 {dimension_numbers = #tpu.dot_dimension_numbers<[1], [0], [0], [1], [0, 0, 1, 1], [], []>} : vector<16x128xf32>, vector<128x32xf32>, vector<16x32xf32> -> vector<16x32xf32>
    %c0_12 = arith.constant 0 : index
    %c0_13 = arith.constant 0 : index
    %21 = vector.load %arg5[%c0_12, %c0_13] : memref<1x32xf32, #tpu.memory_space<vmem>>, vector<1x32xf32>
    %22 = vector.broadcast %21 : vector<1x32xf32> to vector<16x32xf32>
    %23 = arith.addf %20, %22 : vector<16x32xf32>
    %c0_14 = arith.constant 0 : index
    %c0_15 = arith.constant 0 : index
    %24 = vector.load %arg6[%c0_14, %c0_15] : memref<16x32xf32, #tpu.memory_space<vmem>>, vector<16x32xf32>
    tpu.vector_store %arg6[%c0_14, %c0_15], %23 {strides = array<i32>} : memref<16x32xf32, #tpu.memory_space<vmem>>, vector<16x32xf32>,
    return
  }
  func.func @transform_0(%arg0: i32) -> (i32, i32) {
    %c0_i32 = arith.constant 0 : i32
    %c0_i32_0 = arith.constant 0 : i32
    return %arg0, %c0_i32 : i32, i32
  }
  func.func @transform_1(%arg0: i32) -> (i32, i32) {
    %c0_i32 = arith.constant 0 : i32
    %c0_i32_0 = arith.constant 0 : i32
    %c0_i32_1 = arith.constant 0 : i32
    return %c0_i32, %c0_i32_0 : i32, i32
  }
  func.func @transform_2(%arg0: i32) -> (i32, i32) {
    %c0_i32 = arith.constant 0 : i32
    %c0_i32_0 = arith.constant 0 : i32
    %c0_i32_1 = arith.constant 0 : i32
    return %c0_i32, %c0_i32_0 : i32, i32
  }
  func.func @transform_3(%arg0: i32) -> (i32, i32) {
    %c0_i32 = arith.constant 0 : i32
    %c0_i32_0 = arith.constant 0 : i32
    %c0_i32_1 = arith.constant 0 : i32
    return %c0_i32, %c0_i32_0 : i32, i32
  }
  func.func @transform_4(%arg0: i32) -> (i32, i32) {
    %c0_i32 = arith.constant 0 : i32
    %c0_i32_0 = arith.constant 0 : i32
    %c0_i32_1 = arith.constant 0 : i32
    return %c0_i32, %c0_i32_0 : i32, i32
  }
  func.func @transform_5(%arg0: i32) -> (i32, i32) {
    %c0_i32 = arith.constant 0 : i32
    %c0_i32_0 = arith.constant 0 : i32
    return %arg0, %c0_i32 : i32, i32
  }
}

</mosaic_0001>

<bundles_post_ra>
// kernel: mlp_forward.1
= control target key start
LH: loop header
LB: loop body
LE: loop exit
PB: predicated region body
PF: predicated region fallthrough
CT: control target
= control target key end

     0   :  { %s307_s0 = inlined_call_operand.vmem [shape: f32[16,32], index: 0, kind: input, shape index: {}]   ;;  %s308_s1 = inlined_call_operand.vmem [shape: f32[32,128], index: 1, kind: input, shape index: {}]   ;;  %s309_s2 = inlined_call_operand.vmem [shape: f32[1,128], index: 2, kind: input, shape index: {}]   ;;  %s310_s3 = inlined_call_operand.vmem [shape: f32[128,32], index: 3, kind: input, shape index: {}]   ;;  %s311_s4 = inlined_call_operand.vmem [shape: f32[1,32], index: 4, kind: input, shape index: {}]   ;;  %s312_s5 = inlined_call_operand.hbm [shape: f32[16,32], index: 5, kind: output, shape index: {}]  }
   0x1   :  { %v26_v0 = vld [vmem:[%s308_s1 + $0x18] sm:$0xff]  ;;  %v25_v1 = vld [vmem:[%s308_s1 + $0x10] sm:$0xff]  ;;  %v24_v2 = vld [vmem:[%s308_s1 + $0x8] sm:$0xff] }
   0x2   :  { %50 = vmatpush.msra.mxu0 %v26_v0  ;;  %v94_v3 = vld [vmem:[%s310_s3 + $0x78] sm:$0xff]  ;;  %v93_v4 = vld [vmem:[%s310_s3 + $0x70] sm:$0xff]  ;;  %v23_v5 = vld [vmem:[%s308_s1] sm:$0xff] }
   0x3   :  { %99 = vmatpush.msra.mxu1 %v94_v3  ;;  %v92_v6 = vld [vmem:[%s310_s3 + $0x68] sm:$0xff]  ;;  %144 = vmatpush.msra.mxu2 %v94_v3 }
   0x4   :  { %51 = vmatpush.msra.mxu0 %v25_v1 }
   0x5   :  { %10 = vsyncpa [#allocation3], 0  ;;  %v21_v7 = vld [vmem:[%s307_s0] sm:$0xff]  ;;  %vm31_vm0 = vcmask 261120   ;;  %100 = vmatpush.msra.mxu1 %v93_v4  ;;  %145 = vmatpush.msra.mxu2 %v93_v4  ;;  %v22_v8 = vld [vmem:[%s307_s0 + $0x8] sm:$0xff]  ;;  %s195_s11 = smov [#allocation2]  }
   0x6   :  { %52 = vmatpush.msra.mxu0 %v24_v2  ;;  %v91_v9 = vld [vmem:[%s310_s3 + $0x60] sm:$0xff]  ;;  %v90_v10 = vld [vmem:[%s310_s3 + $0x58] sm:$0xff]  ;;  %v89_v11 = vld [vmem:[%s310_s3 + $0x50] sm:$0xff]  ;;  %s128_s12 = sshll.u32 %s195_s11, 4  ;;  %s130_s15 = sshll.u32 %s312_s5, 4  ;;  %s129_s12 = int_to_ptr.vmem [resolvable:$true] %s128_s12  ;;  %s131_s15 = int_to_ptr.hbm [resolvable:$true] %s130_s15 }
   0x7   :  { %101 = vmatpush.msra.mxu1 %v92_v6  ;;  %146 = vmatpush.msra.mxu2 %v92_v6  ;;  %v88_v12 = vld [vmem:[%s310_s3 + $0x48] sm:$0xff]  ;;  %v87_v13 = vld [vmem:[%s310_s3 + $0x40] sm:$0xff]  ;;  %v86_v14 = vld [vmem:[%s310_s3 + $0x38] sm:$0xff]  ;;  %s196_s0 = smov 128   ;;  %s197_s16 = smov 8  }
   0x8   :  { %53 = vmatpush.msra.mxu0 %v23_v5  ;;  %v85_v15 = vld [vmem:[%s310_s3 + $0x30] sm:$0xff]  ;;  %v84_v16 = vld [vmem:[%s310_s3 + $0x28] sm:$0xff]  ;;  %v83_v17 = vld [vmem:[%s310_s3 + $0x20] sm:$0xff] }
   0x9   :  { %142 = vmatmul.msk.f32.vlgmr.msra.gmra.mxu0 %vm31_vm0, %v21_v7  ;;  %102 = vmatpush.msra.mxu1 %v91_v9  ;;  %v82_v18 = vld [vmem:[%s310_s3 + $0x18] sm:$0xff]  ;;  %v81_v19 = vld [vmem:[%s310_s3 + $0x10] sm:$0xff]  ;;  %v80_v20 = vld [vmem:[%s310_s3 + $0x8] sm:$0xff] }
   0xa   :  { %147 = vmatpush.msra.mxu2 %v91_v9  ;;  %v79_v21 = vld [vmem:[%s310_s3] sm:$0xff] }
   0xb   :  { %103 = vmatpush.msra.mxu1 %v90_v10  ;;  %v163_v22 = vld [vmem:[%s309_s2] ss:$0 sm:$0xff] }
   0xc   :  { %148 = vmatpush.msra.mxu2 %v90_v10  ;;  %v164_v45 = vld [vmem:[%s311_s4] ss:$0 sm:$0xff] }
   0xd   :  { %104 = vmatpush.msra.mxu1 %v89_v11 }
   0xe   :  { %149 = vmatpush.msra.mxu2 %v89_v11 }
   0xf   :  { %105 = vmatpush.msra.mxu1 %v88_v12 }
  0x10   :  { %150 = vmatpush.msra.mxu2 %v88_v12 }
  0x11   :  { %143 = vmatmul.msk.f32.gmra.mxu0 %vm31_vm0, %v22_v8  ;;  %106 = vmatpush.msra.mxu1 %v87_v13 }
  0x12   :  { %151 = vmatpush.msra.mxu2 %v87_v13 }
  0x13   :  { %107 = vmatpush.msra.mxu1 %v86_v14 }
  0x14   :  { %152 = vmatpush.msra.mxu2 %v86_v14 }
  0x15   :  { %108 = vmatpush.msra.mxu1 %v85_v15 }
  0x16   :  { %153 = vmatpush.msra.mxu2 %v85_v15 }
  0x17   :  { %109 = vmatpush.msra.mxu1 %v84_v16 }
  0x18   :  { %154 = vmatpush.msra.mxu2 %v84_v16 }
  0x19   :  { %110 = vmatpush.msra.mxu1 %v83_v17 }
  0x1a   :  { %155 = vmatpush.msra.mxu2 %v83_v17 }
  0x1b   :  { %111 = vmatpush.msra.mxu1 %v82_v18 }
  0x1c   :  { %156 = vmatpush.msra.mxu2 %v82_v18 }
  0x1d   :  { %112 = vmatpush.msra.mxu1 %v81_v19 }
  0x1e   :  { %157 = vmatpush.msra.mxu2 %v81_v19 }
  0x1f   :  { %113 = vmatpush.msra.mxu1 %v80_v20 }
  0x20   :  { %158 = vmatpush.msra.mxu2 %v80_v20 }
  0x21   :  { %114 = vmatpush.msra.mxu1 %v79_v21 }
  0x22   :  { %159 = vmatpush.msra.mxu2 %v79_v21 }
  0x86   :  { %v55_v23 = vpop.f32.mrf.mxu0 }
  0x87   :  { %v56_v24 = vadd.f32 %v163_v22, %v55_v23 }
  0x89   :  { %v61_v25 = vmul.f32 %v56_v24, %v56_v24 }
  0x8b   :  { %v63_v26 = vmul.f32 %v61_v25, %v56_v24 }
  0x8d   :  { %v65_v27 = vmul.f32 0.044715, %v63_v26 }
  0x8e   :  { %v58_v28 = vpop.f32.mrf.mxu0 }
  0x8f   :  { %v59_v29 = vadd.f32 %v163_v22, %v58_v28  ;;  %v67_v30 = vadd.f32 %v65_v27, %v56_v24 }
  0x91   :  { %v62_v31 = vmul.f32 %v59_v29, %v59_v29  ;;  %v69_v32 = vmul.f32 0.7978846, %v67_v30 }
  0x93   :  { %v64_v33 = vmul.f32 %v62_v31, %v59_v29  ;;  %165 = vtanh.f32 %v69_v32 }
  0x95   :  { %v66_v34 = vmul.f32 0.044715, %v64_v33 }
  0x97   :  { %v68_v35 = vadd.f32 %v66_v34, %v59_v29 }
  0x99   :  { %v166_v36 = vpop.eup %165  ;;  %v70_v37 = vmul.f32 0.7978846, %v68_v35 }
  0x9a   :  { %v73_v38 = vadd.f32 1.0, %v166_v36 }
  0x9b   :  { %167 = vtanh.f32 %v70_v37 }
  0x9c   :  { %v75_v39 = vmul.f32 0.5, %v73_v38 }
  0x9e   :  { %v77_v40 = vmul.f32 %v75_v39, %v56_v24 }
  0xa0   :  { %115 = vmatmul.f32.vlgmr.msra.gmra.mxu1 %v77_v40 }
  0xa1   :  { %v168_v41 = vpop.eup %167 }
  0xa2   :  { %v74_v42 = vadd.f32 1.0, %v168_v41 }
  0xa4   :  { %v76_v43 = vmul.f32 0.5, %v74_v42 }
  0xa6   :  { %v78_v44 = vmul.f32 %v76_v43, %v59_v29 }
  0xa8   :  { %118 = vmatmul.f32.vlgmr.msra.gmra.mxu2 %v78_v44 }
 0x11d   :  { %v116_v46 = vpop.f32.mrf.mxu1 }
 0x11e   :  { %v117_v47 = vadd.f32 %v164_v45, %v116_v46 }
 0x120   :  { %122 = vst.msk [vmem:[#allocation2] sm:$0xff] %vm31_vm0, %v117_v47 }
 0x12b   :  { %v119_v48 = vpop.f32.mrf.mxu2 }
 0x12c   :  { %v120_v49 = vadd.f32 %v164_v45, %v119_v48 }
 0x12e   :  { %123 = vst.msk [vmem:[#allocation2 + $0x8] sm:$0xff] %vm31_vm0, %v120_v49 }
 0x12f   :  { %136 = dma.vmem_to_hbm [thread:$0]  %s129_s12, 256, %s131_s15, [#allocation3], %s196_s0, %s196_s0, %s197_s16  }
 0x130   :  { %193 = dma.done.wait [#allocation3], 256  }
 0x131   :  { %194 = vsyncadd [#allocation3], 4294967040 }
 0x132   :  { %141 = vsyncpa [#allocation3], 1 }

</bundles_post_ra>
